<compile_context>
chip_gen: v7x
topology: tpu7x:2x2x1
jax: 0.10.0
libtpu: 0.0.40
codegen_flags: <defaults>
</compile_context>

<pallas_src>
import jax
import jax.numpy as jnp
from jax.experimental import pallas as pl
from jax.experimental.pallas import tpu as pltpu


def _largest_divisor_leq(n, cap):
    cap = max(1, min(int(cap), n))
    for d in range(cap, 0, -1):
        if n % d == 0:
            return d
    return 1


def _make_kernel(hw_true, hw_pad):
    padded = hw_pad != hw_true
    inv_hw = 1.0 / float(hw_true)

    def kernel(x_ref, w1t_ref, w2t_ref, o_ref):
        # x_ref : (Nb, C, HW_pad) f32   — channels on sublanes, spatial on lanes
        # w1t_ref: (C, Ch)   first 1x1 conv weight, pre-transposed
        # w2t_ref: (Ch, C)   second 1x1 conv weight, pre-transposed
        x = x_ref[...]                                        # (Nb, C, HWp)

        # Global average pool: padded lanes are zero, divide by true HW.
        avg = jnp.sum(x, axis=-1) * inv_hw                    # (Nb, C)

        # Global max pool: ignore padded lanes.
        if padded:
            lane = jax.lax.broadcasted_iota(jnp.int32, x.shape, dimension=2)
            xm = jnp.where(lane < hw_true, x, -jnp.inf)
        else:
            xm = x
        mx = jnp.max(xm, axis=-1)                             # (Nb, C)

        def mlp(p):  # p: (Nb, C)
            h = jnp.dot(p, w1t_ref[...], preferred_element_type=jnp.float32)
            h = jnp.maximum(h, 0.0)                           # ReLU
            return jnp.dot(h, w2t_ref[...], preferred_element_type=jnp.float32)

        scale = jax.nn.sigmoid(mlp(avg) + mlp(mx))            # (Nb, C)
        o_ref[...] = x * scale[:, :, None]                    # broadcast over HW

    return kernel


def attention_module(x, w1, w2, *, target_block_bytes=4 << 20):
    """x: (N, C, H, W) float32; w1: (C//r, C); w2: (C, C//r)."""
    N, C, H, W = x.shape
    Ch = w1.shape[0]
    HW = H * W
    HW_pad = pl.cdiv(HW, 128) * 128                           # lane-dense stores

    x2 = x.reshape(N, C, HW).astype(jnp.float32)
    if HW_pad != HW:
        x2 = jnp.pad(x2, ((0, 0), (0, 0), (0, HW_pad - HW)))

    # Block several batch elements per grid step (~target_block_bytes), but keep
    # at least 2 grid steps when N >= 2 so both v7x TensorCores get work.
    itemsize = x2.dtype.itemsize
    per_batch_bytes = C * HW_pad * itemsize
    nb_cap = max(1, target_block_bytes // per_batch_bytes)
    if N >= 2:
        nb_cap = min(nb_cap, max(1, N // 2))
    Nb = _largest_divisor_leq(N, nb_cap)
    grid = (N // Nb,)

    # Pre-transpose the tiny weights once in XLA (avoids per-step XLU transposes).
    w1t = jnp.asarray(w1, jnp.float32).T                      # (C, Ch)
    w2t = jnp.asarray(w2, jnp.float32).T                      # (Ch, C)

    block_bytes = Nb * per_batch_bytes
    weight_bytes = (w1t.size + w2t.size) * 4
    # Double-buffered in + out blocks + weights + margin; stay modest for v7x's
    # 64 MiB VMEM while exceeding v5e's 16 MiB default scoped limit.
    vmem_limit = int(min(max(4 * block_bytes + 4 * weight_bytes + (2 << 20),
                             32 << 20), 48 << 20))

    cost = pl.CostEstimate(
        flops=8 * N * C * Ch + N * C * HW_pad + 2 * N * C,
        transcendentals=N * C,
        bytes_accessed=2 * N * C * HW_pad * itemsize + weight_bytes,
    )

    out = pl.pallas_call(
        _make_kernel(HW, HW_pad),
        out_shape=jax.ShapeDtypeStruct((N, C, HW_pad), jnp.float32),
        grid_spec=pltpu.PrefetchScalarGridSpec(
            num_scalar_prefetch=0,
            grid=grid,
            in_specs=[
                pl.BlockSpec((Nb, C, HW_pad), lambda n: (n, 0, 0)),
                pl.BlockSpec((C, Ch), lambda n: (0, 0)),
                pl.BlockSpec((Ch, C), lambda n: (0, 0)),
            ],
            out_specs=pl.BlockSpec((Nb, C, HW_pad), lambda n: (n, 0, 0)),
        ),
        compiler_params=pltpu.CompilerParams(
            dimension_semantics=("parallel",),
            vmem_limit_bytes=vmem_limit,
        ),
        cost_estimate=cost,
    )(x2, w1t, w2t)

    if HW_pad != HW:
        out = out[:, :, :HW]
    return out.reshape(N, C, H, W).astype(x.dtype)


def _reference(x, w1, w2):
    avg = jnp.mean(x, axis=(2, 3))                 # (N, C)
    mx = jnp.max(x, axis=(2, 3))                   # (N, C)

    def mlp(p):  # p: (N, C)
        h = jnp.maximum(p @ w1.T, 0.0)             # (N, Ch)
        return h @ w2.T                            # (N, C)

    scale = jax.nn.sigmoid(mlp(avg) + mlp(mx))     # (N, C)
    return x * scale[:, :, None, None]


if __name__ == "__main__":
    def run_case(key, N, C, H, W, ratio):
        Ch = max(1, C // ratio)
        kx, k1, k2 = jax.random.split(key, 3)
        x = jax.random.normal(kx, (N, C, H, W), dtype=jnp.float32)
        # Deterministic weight init (Conv2d 1x1, bias=False): (out_ch, in_ch).
        w1 = jax.random.normal(k1, (Ch, C), dtype=jnp.float32) * (1.0 / jnp.sqrt(C))
        w2 = jax.random.normal(k2, (C, Ch), dtype=jnp.float32) * (1.0 / jnp.sqrt(Ch))

        y = jax.block_until_ready(attention_module(x, w1, w2))
        y_ref = _reference(x, w1, w2)
        assert jnp.allclose(y, y_ref, atol=1e-5, rtol=1e-5), "mismatch vs reference"

    key = jax.random.PRNGKey(0)
    ka, kb = jax.random.split(key)
    # Lane-aligned case (HW = 256 is a multiple of 128), grid = (2,).
    run_case(ka, 2, 32, 16, 16, 8)
    # Late-CNN style case: HW = 49 -> padded to 128 (mean/max masking path).
    run_case(kb, 4, 16, 7, 7, 8)

    print("KERNEL_OK")
</pallas_src>

<mosaic_0001>
module attributes {stable_mosaic.version = 11 : i64} {
  func.func @kernel(%arg0: i32, %arg1: memref<1x32x256xf32, #tpu.memory_space<vmem>>, %arg2: memref<32x4xf32, #tpu.memory_space<vmem>>, %arg3: memref<4x32xf32, #tpu.memory_space<vmem>>, %arg4: memref<1x32x256xf32, #tpu.memory_space<vmem>>) attributes {dimension_semantics = [#tpu.dimension_semantics<parallel>], iteration_bounds = array<i64: 2>, scalar_prefetch = 0 : i64, scratch_operands = 0 : i64, tpu.core_type = #tpu.core_type<tc>, window_params = [{transform_indices = @transform_0, window_bounds = array<i64: 1, 32, 256>}, {pipeline_mode = #tpu.pipeline_mode<synchronous>, transform_indices = @transform_1, window_bounds = array<i64: 32, 4>}, {pipeline_mode = #tpu.pipeline_mode<synchronous>, transform_indices = @transform_2, window_bounds = array<i64: 4, 32>}, {transform_indices = @transform_3, window_bounds = array<i64: 1, 32, 256>}]} {
    %c0 = arith.constant 0 : index
    %c0_0 = arith.constant 0 : index
    %c0_1 = arith.constant 0 : index
    %0 = vector.load %arg1[%c0, %c0_0, %c0_1] : memref<1x32x256xf32, #tpu.memory_space<vmem>>, vector<1x32x256xf32>
    %cst = arith.constant dense<0.000000e+00> : vector<1x32xf32>
    %1 = vector.multi_reduction <add>, %0, %cst [2] : vector<1x32x256xf32> to vector<1x32xf32>
    %cst_2 = arith.constant 3.906250e-03 : f32
    %2 = vector.broadcast %cst_2 : f32 to vector<1x32xf32>
    %3 = arith.mulf %1, %2 : vector<1x32xf32>
    %cst_3 = arith.constant dense<0xFF800000> : vector<1x32xf32>
    %4 = vector.multi_reduction <maximumf>, %0, %cst_3 [2] : vector<1x32x256xf32> to vector<1x32xf32>
    %c0_4 = arith.constant 0 : index
    %c0_5 = arith.constant 0 : index
    %5 = vector.load %arg2[%c0_4, %c0_5] : memref<32x4xf32, #tpu.memory_space<vmem>>, vector<32x4xf32>
    %cst_6 = arith.constant dense<0.000000e+00> : vector<1x4xf32>
    %6 = tpu.matmul %3, %5, %cst_6 {dimension_numbers = #tpu.dot_dimension_numbers<[1], [0], [0], [1], [0, 0, 1, 1], [], []>} : vector<1x32xf32>, vector<32x4xf32>, vector<1x4xf32> -> vector<1x4xf32>
    %cst_7 = arith.constant 0.000000e+00 : f32
    %7 = vector.broadcast %cst_7 : f32 to vector<1x4xf32>
    %8 = arith.maximumf %6, %7 : vector<1x4xf32>
    %c0_8 = arith.constant 0 : index
    %c0_9 = arith.constant 0 : index
    %9 = vector.load %arg3[%c0_8, %c0_9] : memref<4x32xf32, #tpu.memory_space<vmem>>, vector<4x32xf32>
    %cst_10 = arith.constant dense<0.000000e+00> : vector<1x32xf32>
    %10 = tpu.matmul %8, %9, %cst_10 {dimension_numbers = #tpu.dot_dimension_numbers<[1], [0], [0], [1], [0, 0, 1, 1], [], []>} : vector<1x4xf32>, vector<4x32xf32>, vector<1x32xf32> -> vector<1x32xf32>
    %c0_11 = arith.constant 0 : index
    %c0_12 = arith.constant 0 : index
    %11 = vector.load %arg2[%c0_11, %c0_12] : memref<32x4xf32, #tpu.memory_space<vmem>>, vector<32x4xf32>
    %cst_13 = arith.constant dense<0.000000e+00> : vector<1x4xf32>
    %12 = tpu.matmul %4, %11, %cst_13 {dimension_numbers = #tpu.dot_dimension_numbers<[1], [0], [0], [1], [0, 0, 1, 1], [], []>} : vector<1x32xf32>, vector<32x4xf32>, vector<1x4xf32> -> vector<1x4xf32>
    %cst_14 = arith.constant 0.000000e+00 : f32
    %13 = vector.broadcast %cst_14 : f32 to vector<1x4xf32>
    %14 = arith.maximumf %12, %13 : vector<1x4xf32>
    %c0_15 = arith.constant 0 : index
    %c0_16 = arith.constant 0 : index
    %15 = vector.load %arg3[%c0_15, %c0_16] : memref<4x32xf32, #tpu.memory_space<vmem>>, vector<4x32xf32>
    %cst_17 = arith.constant dense<0.000000e+00> : vector<1x32xf32>
    %16 = tpu.matmul %14, %15, %cst_17 {dimension_numbers = #tpu.dot_dimension_numbers<[1], [0], [0], [1], [0, 0, 1, 1], [], []>} : vector<1x4xf32>, vector<4x32xf32>, vector<1x32xf32> -> vector<1x32xf32>
    %17 = arith.addf %10, %16 : vector<1x32xf32>
    %18 = arith.negf %17 : vector<1x32xf32>
    %19 = math.exp %18 : vector<1x32xf32>
    %cst_18 = arith.constant 1.000000e+00 : f32
    %20 = vector.broadcast %cst_18 : f32 to vector<1x32xf32>
    %21 = arith.addf %20, %19 : vector<1x32xf32>
    %22 = arith.divf %20, %21 : vector<1x32xf32>
    %23 = vector.shape_cast %22 : vector<1x32xf32> to vector<1x32x1xf32>
    %24 = vector.broadcast %23 : vector<1x32x1xf32> to vector<1x32x256xf32>
    %25 = arith.mulf %0, %24 : vector<1x32x256xf32>
    %c0_19 = arith.constant 0 : index
    %c0_20 = arith.constant 0 : index
    %c0_21 = arith.constant 0 : index
    %26 = vector.load %arg4[%c0_19, %c0_20, %c0_21] : memref<1x32x256xf32, #tpu.memory_space<vmem>>, vector<1x32x256xf32>
    tpu.vector_store %arg4[%c0_19, %c0_20, %c0_21], %25 {strides = array<i32>} : memref<1x32x256xf32, #tpu.memory_space<vmem>>, vector<1x32x256xf32>,
    return
  }
  func.func @transform_0(%arg0: i32) -> (i32, i32, i32) {
    %c0_i32 = arith.constant 0 : i32
    %c0_i32_0 = arith.constant 0 : i32
    %c0_i32_1 = arith.constant 0 : i32
    return %arg0, %c0_i32, %c0_i32_0 : i32, i32, i32
  }
  func.func @transform_1(%arg0: i32) -> (i32, i32) {
    %c0_i32 = arith.constant 0 : i32
    %c0_i32_0 = arith.constant 0 : i32
    %c0_i32_1 = arith.constant 0 : i32
    return %c0_i32, %c0_i32_0 : i32, i32
  }
  func.func @transform_2(%arg0: i32) -> (i32, i32) {
    %c0_i32 = arith.constant 0 : i32
    %c0_i32_0 = arith.constant 0 : i32
    %c0_i32_1 = arith.constant 0 : i32
    return %c0_i32, %c0_i32_0 : i32, i32
  }
  func.func @transform_3(%arg0: i32) -> (i32, i32, i32) {
    %c0_i32 = arith.constant 0 : i32
    %c0_i32_0 = arith.constant 0 : i32
    %c0_i32_1 = arith.constant 0 : i32
    return %arg0, %c0_i32, %c0_i32_0 : i32, i32, i32
  }
}

</mosaic_0001>

<bundles_post_ra>
// kernel: tpu_custom_call.1
= control target key start
LH: loop header
LB: loop body
LE: loop exit
PB: predicated region body
PF: predicated region fallthrough
CT: control target
= control target key end

     0   :  { %8 = vsyncpa [#allocation3], 0  ;;  %s1212_s0 = inlined_call_operand.hbm [shape: f32[2,32,256], index: 0, kind: input, shape index: {}]   ;;  %s1213_s1 = inlined_call_operand.vmem [shape: f32[32,4], index: 1, kind: input, shape index: {}]   ;;  %s1214_s2 = inlined_call_operand.vmem [shape: f32[4,32], index: 2, kind: input, shape index: {}]   ;;  %s1215_s3 = inlined_call_operand.hbm [shape: f32[2,32,256], index: 3, kind: output, shape index: {}]  }
   0x1   :  { %10 = vsyncpa [#allocation3 + $0x1], 0 }
   0x2   :  { %11 = vsyncpa [#allocation4], 0 }
   0x3   :  { %13 = vsyncpa [#allocation4 + $0x1], 0  ;;  %s976_s12 = smov 0   ;;  %s978_s13 = smov 0  }
   0x4   :  { %s980_s14 = smov 0   ;;  %s982_s15 = smov 0  }
   0x5 LB: > { %s997_s16 = sadd.s32 4294967295, %s945_s15   ;;  %s710_s17 = sadd.s32 4294967294, %s945_s15   ;;  %s945_s15 = sphi %s982_s15, %s1228_s15   ;;  %s941_s14 = sphi %s980_s14, %s1227_s14   ;;  %s937_s13 = sphi %s978_s13, %s1226_s13   ;;  %s933_s12 = sphi %s976_s12, %s1225_s12  }
   0x6   : > { %s1001_s18 = sadd.s32 1, %s945_s15   ;;  %s26_s19 = sadd.s32 1, %s941_s14 }
   0x7   : > { %s23_s20 = ssub.s32 %s945_s15, %s1001_s18  ;;  %p33_p0 = scmp.ne.s32.totalorder %s941_s14, %s937_s13 }
   0x8   : > { %p24_p1 = scmp.eq.s32.totalorder %s23_s20, 0  ;;  %p34_p2 = scmp.eq.s32.totalorder %s945_s15, 0 }
   0x9   : > { %p39_p3 = scmp.ne.s32.totalorder %s937_s13, %s933_s12  ;;  %p40_p4 = scmp.eq.s32.totalorder %s997_s16, 0 }
   0xa   : > { %s1013_s21 = scalar_select %p24_p1, %s941_s14, %s26_s19  }
   0xb   : > { %p1015_p5 = por %p34_p2, %p33_p0  ;;  %p1019_p6 = por %p40_p4, %p39_p3 }
   0xc   : > { %p105_p7 = scmp.eq.s32.totalorder %s997_s16, 1  ;;  %p111_p8 = scmp.eq.s32.totalorder %s710_s17, 1 }
   0xd   : > { %p804_p10 = scmp.lt.s32.totalorder %s945_s15, 2  ;;  %s137_s26 = sand.u32 1, %s941_s14  }
   0xe   : > { %p1026_p11 = por %p105_p7, %p33_p0  ;;  %p1030_p12 = por %p111_p8, %p39_p3 }
   0xf   : > { %s731_s27 = sshll.u32 %s945_s15, 10  ;;  %s713_s28 = sshll.u32 %s137_s26, 6 }
  0x10   : > { %s1219_s24 = scalar_select %p1026_p11, 1, 0 }
  0x11   : > { %s1220_s25 = scalar_select %p1030_p12, 1, 0 }
  0x12   : > { %s1039_s4 = scalar_lea.hbm %s1212_s0, %s731_s27  ;;  %s141_s5 = scalar_lea.vmem [#allocation2], %s713_s28 }
  0x13   : > { %s148_s6 = sshll.u32 %s141_s5, 4  ;;  %p1043_p13 = pnand %p804_p10, %p1015_p5  ;;  %s1047_s6 = int_to_ptr.vmem [resolvable:$true] %s148_s6 }
  0x14   : > { %s1049_s8 = scalar_lea.sflag [#allocation3], %s137_s26  ;;  %s849_s9 = scalar_lea.hbm %s1039_s4, 1024 }
  0x15   : > { %p850_p0 = scmp.ne.s32.totalorder %s1039_s4, %s849_s9  ;;  %p851_p1 = pneg %p1043_p13 }
  0x16   : > { %s854_s17 = scalar_lea.hbm %s1212_s0, 2048  ;;  %p855_p4 = scmp.lt.u32.totalorder %s1039_s4, %s1212_s0 }
  0x17   : > { %p852_p2 = pnand %p851_p1, %p850_p0  ;;  %p856_p5 = scmp.lt.u32.totalorder %s854_s17, %s849_s9 }
  0x18   : > { %p858_p8 = scmp.lt.u32.totalorder %s849_s9, %s1039_s4 }
  0x19   : > { %p853_p3 = pneg %p852_p2  ;;  %p857_p7 = por %p856_p5, %p855_p4 }
  0x1b   : > { %p859_p10 = por %p858_p8, %p857_p7 }
  0x1d   : > { %p860_p9 = pnand %p859_p10, %p853_p3 }
  0x1f   : > { %863 = shalt.err (!%p860_p9)
}
  0x20   : > { %s864_s22 = scalar_lea.vmem %s1047_s6, 1024  ;;  %s947_s26 = smov [#allocation2]  }
  0x21   : > { %p865_p0 = scmp.ne.s32.totalorder %s1047_s6, %s864_s22  ;;  %s869_s27 = sshll.u32 %s947_s26, 4  ;;  %s870_s27 = int_to_ptr.vmem [resolvable:$false] %s869_s27 }
  0x22   : > { %s871_s28 = scalar_lea.vmem %s870_s27, 2048  ;;  %p872_p11 = scmp.lt.s32.totalorder %s1047_s6, %s870_s27 }
  0x23   : > { %p867_p2 = pnand %p865_p0, %p851_p1  ;;  %p873_p4 = scmp.lt.s32.totalorder %s871_s28, %s864_s22 }
  0x25   : > { %p868_p12 = pneg %p867_p2  ;;  %p874_p5 = por %p873_p4, %p872_p11 }
  0x27   : > { %p875_p7 = pnand %p874_p5, %p868_p12 }
  0x29   : > { %878 = shalt.err (!%p875_p7)
}
  0x2a   : > { %s948_s29 = smov 256   ;;  %s949_s30 = smov 16  }
  0x2b   : > { %799 = dma.hbm_to_vmem [thread:$0]  (!%p1043_p13), %s1039_s4, 1024, %s1047_s6, %s1049_s8, %s948_s29, %s948_s29, %s949_s30  }
  0x2c   : > { %p716_p9 = scmp.ge.s32.totalorder %s945_s15, 1  ;;  %p156_p1 = scmp.lt.s32.totalorder %s945_s15, 3 }
  0x2e   : > { %p157_p3 = pnand %p716_p9, %p156_p1 }
  0x2f   : > { %s1080_s5 = sand.u32 (!%p157_p3), 1, %s937_s13  }
  0x30   : > { %160 = sbr.rel (%p157_p3) target bundleno = 814 (0x32e), region = 32  ;;  %s717_s9 = sshll.u32 (!%p157_p3), %s1080_s5, 6 }
  0x31   : > { %s163_s10 = scalar_lea.sflag (!%p157_p3), [#allocation3], %s1080_s5  ;;  %s166_s11 = scalar_lea.vmem (!%p157_p3), [#allocation2], %s717_s9 }
  0x37   : > { %924 = dma.done.wait (%p1019_p6), %s163_s10, 1024  }
  0x38   : > { %926 = vsyncadd (%p1019_p6), %s163_s10, 4294966272  ;;  %v1090_v0 = vld [vmem:[%s166_s11 + $0x20] sm:$0xff]  ;;  %v1092_v1 = vld [vmem:[%s166_s11 + $0x28] sm:$0xff]  ;;  %v950_v19 = vmov 0.0|0.0   ;;  %vm951_vm0 = vmmov 0   ;;  %v952_v23 = vmov 0.0   ;;  %v233_v24 = vlaneseq }
  0x39   : > { %v1094_v2 = vld [vmem:[%s166_s11] sm:$0xff]  ;;  %v203_v3 = vadd.f32 %v1092_v1, %v1090_v0  ;;  %v1098_v4 = vld [vmem:[%s166_s11 + $0x8] sm:$0xff]  ;;  %v1100_v5 = vld [vmem:[%s166_s11 + $0x30] sm:$0xff]  ;;  %v219_v15 = vmax.f32 %v1090_v0, %v1092_v1  ;;  %779 = vmatprep.subr.bf16.mxu0 %v950_v19  ;;  %785 = vmatprep.subr.bf16.mxu1 %v950_v19  ;;  %vm244_vm1 = vcmask 130112   ;;  %vm251_vm2 = vcmask 195712   ;;  %s188_s27 = scalar_lea.vmem [#allocation5], %s717_s9 }
  0x3a   : > { %v1102_v6 = vld [vmem:[%s166_s11 + $0x38] sm:$0xff]  ;;  %v197_v7 = vadd.f32 %v1098_v4, %v1094_v2  ;;  %v1106_v8 = vld [vmem:[%s166_s11 + $0x10] sm:$0xff]  ;;  %v213_v13 = vmax.f32 %v1094_v2, %v1098_v4  ;;  %v225_v16 = vld [vmem:[%s1213_s1] sm:$0xff]  ;;  %755 = vmatprep.mubr.msk.f32.mxu0 %vm951_vm0, %v952_v23  ;;  %766 = vmatprep.mubr.msk.f32.mxu1 %vm951_vm0, %v952_v23  ;;  %v234_v25 = vand.u32 127, %v233_v24  ;;  %v1136_v26 = vshrl.u32 %v233_v24, 7  ;;  %s637_s28 = sshll.u32 %s188_s27, 4  ;;  %s1161_s28 = int_to_ptr.vmem [resolvable:$true] %s637_s28 }
  0x3b   : > { %v1108_v9 = vld [vmem:[%s166_s11 + $0x18] sm:$0xff]  ;;  %204 = vadd.xlane.f32.xlu1 %v203_v3  ;;  %v206_v10 = vadd.f32 %v1102_v6, %v1100_v5  ;;  %v222_v14 = vmax.f32 %v1100_v5, %v1102_v6  ;;  %v226_v17 = vld [vmem:[%s1213_s1 + $0x8] sm:$0xff]  ;;  %v227_v20 = vld [vmem:[%s1213_s1 + $0x10] sm:$0xff]  ;;  %vm258_vm3 = vcmask 261312   ;;  %vm260_vm4 = vcmask 261120   ;;  %s732_s29 = sshll.u32 %s997_s16, 10 }
  0x3c   : > { %198 = vadd.xlane.f32.xlu0 %v197_v7  ;;  %v200_v11 = vadd.f32 %v1108_v9, %v1106_v8  ;;  %v216_v12 = vmax.f32 %v1106_v8, %v1108_v9  ;;  %v780_v18 = vpack.c.bf16 %v226_v17, %v225_v16  ;;  %v228_v21 = vld [vmem:[%s1213_s1 + $0x18] sm:$0xff]  ;;  %v253_v28 = vadd.s32 4294967272, %v234_v25  ;;  %v334_v60 = vld [vmem:[%s1214_s2] sm:$0xf]  ;;  %s1166_s10 = scalar_lea.hbm %s1215_s3, %s732_s29  ;;  %s624_s16 = scalar_lea.sflag [#allocation4], %s1080_s5 }
  0x3d   : > { %v783_v22 = vpack.c.bf16 %v228_v21, %v227_v20  ;;  %v239_v29 = vadd.s32 4294967288, %v234_v25  ;;  %v246_v30 = vadd.s32 4294967280, %v234_v25  ;;  %v237_v32 = vsub.s32 %v234_v25, %v1136_v26  ;;  %s879_s11 = scalar_lea.vmem %s1161_s28, 1024  ;;  %p1222_p11 = scmp.ne.s32.totalorder %s1219_s24, 0 }
  0x3e   : > { %781 = vmatpush3.bf16.msra.mxu0 %v780_v18  ;;  %787 = vmatpush3.bf16.msra.mxu1 %v780_v18  ;;  %v256_v34 = vsub.s32 %v253_v28, %v1136_v26  ;;  %vm435_vm5 = vcmask 1043456   ;;  %vm431_vm6 = vcmask 31744   ;;  %p880_p6 = scmp.ne.s32.totalorder %s1161_s28, %s879_s11  ;;  %s953_s23 = smov [#allocation5]  }
  0x3f   : > { %207 = vadd.xlane.f32.xlu1 %v206_v10  ;;  %782 = vmatprep.subr.bf16.mxu0 %v950_v19  ;;  %v242_v36 = vsub.s32 %v239_v29, %v1136_v26  ;;  %v249_v37 = vsub.s32 %v246_v30, %v1136_v26  ;;  %s883_s4 = sshll.u32 %s953_s23, 4  ;;  %s884_s4 = int_to_ptr.vmem [resolvable:$false] %s883_s4 }
  0x40   : > { %201 = vadd.xlane.f32.xlu0 %v200_v11  ;;  %788 = vmatprep.subr.bf16.mxu1 %v950_v19  ;;  %v590_v19 = vsub.s32 0, %v1136_v26  ;;  %p881_p12 = pnand %p880_p6, %p1222_p11  ;;  %s885_s6 = scalar_lea.vmem %s884_s4, 2048 }
  0x41   : > { %p886_p8 = scmp.lt.s32.totalorder %s1161_s28, %s884_s4  ;;  %p887_p10 = scmp.lt.s32.totalorder %s885_s6, %s879_s11 }
  0x42   : > { %784 = vmatpush3.bf16.msra.mxu0 %v783_v22  ;;  %790 = vmatpush3.bf16.msra.mxu1 %v783_v22  ;;  %p882_p13 = pneg %p881_p12 }
  0x43   : > { %217 = vmax.xlane.f32.xlu1 %v216_v12  ;;  %774 = vmatprep.subr.mxu0 %v952_v23  ;;  %p888_p0 = por %p887_p10, %p886_p8 }
  0x44   : > { %214 = vmax.xlane.f32.xlu0 %v213_v13  ;;  %769 = vmatprep.subr.mxu1 %v952_v23 }
  0x45   : > { %p889_p2 = pnand %p888_p0, %p882_p13 }
  0x47   : > { %223 = vmax.xlane.f32.xlu1 %v222_v14 }
  0x48   : > { %220 = vmax.xlane.f32.xlu0 %v219_v15 }
  0xc8   : > { %v205_v27 = vpop.xlane.xlu1 %204 }
  0xc9   : > { %v199_v31 = vpop.xlane.xlu0 %198  ;;  %v211_v38 = vmul.f32 0.00390625, %v205_v27 }
  0xca   : > { %v209_v33 = vmul.f32 0.00390625, %v199_v31 }
  0xcb   : > { %v250_v46 = vrot.slane %v211_v38, %v249_v37 }
  0xcc   : > { %v208_v35 = vpop.xlane.xlu1 %207  ;;  %v238_v42 = vrot.slane %v209_v33, %v237_v32 }
  0xcd   : > { %v212_v39 = vmul.f32 0.00390625, %v208_v35  ;;  %v202_v40 = vpop.xlane.xlu0 %201 }
  0xce   : > { %v210_v41 = vmul.f32 0.00390625, %v202_v40 }
  0xcf   : > { %v257_v43 = vrot.slane %v212_v39, %v256_v34 }
  0xd0   : > { %v243_v44 = vrot.slane %v210_v41, %v242_v36  ;;  %v218_v45 = vpop.xlane.xlu1 %217 }
  0xd1   : > { %v215_v47 = vpop.xlane.xlu0 %214  ;;  %v346_v49 = vrot.slane %v218_v45, %v242_v36 }
  0xd2   : > { %v245_v48 = vsel %vm244_vm1, %v243_v44, %v238_v42  ;;  %v342_v50 = vrot.slane %v215_v47, %v237_v32 }
  0xd3   : > { %v252_v51 = vsel %vm251_vm2, %v250_v46, %v245_v48 }
  0xd4   : > { %v259_v52 = vsel %vm258_vm3, %v257_v43, %v252_v51  ;;  %v224_v53 = vpop.xlane.xlu1 %223  ;;  %v347_v57 = vsel %vm244_vm1, %v346_v49, %v342_v50 }
  0xd5   : > { %756 = vmatmul.mubr.msk.f32.vlgmr.msra.gmra.mrb[0].mxu0 %vm260_vm4, %v259_v52  ;;  %v221_v54 = vpop.xlane.xlu0 %220  ;;  %v356_v55 = vrot.slane %v224_v53, %v256_v34 }
  0xd6   : > { %v351_v56 = vrot.slane %v221_v54, %v249_v37  ;;  %776 = vmatprep.mubr.msk.f32.mxu0 %vm951_vm0, %v952_v23  ;;  %775 = vmatpush3.msk.msra.mxu0 %vm435_vm5, %v334_v60 }
  0xd8   : > { %v352_v58 = vsel %vm251_vm2, %v351_v56, %v347_v57 }
  0xd9   : > { %v357_v59 = vsel %vm258_vm3, %v356_v55, %v352_v58 }
  0xda   : > { %767 = vmatmul.mubr.msk.f32.vlgmr.msra.gmra.mrb[0].mxu1 %vm260_vm4, %v357_v59 }
  0xdb   : > { %771 = vmatprep.mubr.msk.f32.mxu1 %vm951_vm0, %v952_v23  ;;  %770 = vmatpush3.msk.msra.mxu1 %vm435_vm5, %v334_v60 }
 0x1a8   : > { %v329_v61 = vpop.f32.mrb[0].mxu0 }
 0x1a9   : > { %v333_v62 = vmax.f32 %v329_v61, 0.0  ;;  %v757_v63 = vpop.f32.mrb[1].mxu0 }
 0x1ab   : > { %777 = vmatmul.mubr.msk.f32.vlgmr.msra.gmra.mrb[2].mxu0 %vm431_vm6, %v333_v62 }
 0x1ad   : > { %v426_v3 = vpop.f32.mrb[0].mxu1 }
 0x1ae   : > { %v430_v7 = vmax.f32 %v426_v3, 0.0  ;;  %v768_v10 = vpop.f32.mrb[1].mxu1 }
 0x1b0   : > { %772 = vmatmul.mubr.msk.f32.vlgmr.msra.gmra.mrb[2].mxu1 %vm431_vm6, %v430_v7 }
 0x27e   : > { %v578_v11 = vpop.f32.mrb[2].mxu0 }
 0x27f   : > { %v778_v12 = vpop.f32.mrb[3].mxu0 }
 0x283   : > { %v505_v13 = vpop.f32.mrb[2].mxu1 }
 0x284   : > { %v579_v14 = vadd.f32 %v578_v11, %v505_v13  ;;  %v773_v15 = vpop.f32.mrb[3].mxu1 }
 0x286   : > { %v725_v16 = vmul.f32 -1.442695, %v579_v14 }
 0x288   : > { %845 = vpow2.f32 %v725_v16 }
 0x292   : > { %v846_v17 = vpop.eup %845 }
 0x293   : > { %v585_v18 = vadd.f32 1.0, %v846_v17 }
 0x295   : > { %847 = vrcp.f32 %v585_v18 }
 0x29f   : > { %v848_v20 = vpop.eup %847 }
 0x2a0   : > { %v591_v21 = vrot.slane %v848_v20, %v590_v19 }
 0x2a2   : > { %597 = vbcast.lane.b32.xlu1 %v591_v21, 264  ;;  %593 = vbcast.lane.b32.xlu0 %v591_v21, 256 }
 0x2a6   : > { %601 = vbcast.lane.b32.xlu1 %v591_v21, 272 }
 0x2aa   : > { %605 = vbcast.lane.b32.xlu1 %v591_v21, 280 }
 0x314   : > { %v598_v22 = vpop.permute.xlu1 %597  ;;  %v594_v23 = vpop.permute.xlu0 %593 }
 0x315   : > { %v609_v24 = vmul.f32 %v598_v22, %v1106_v8  ;;  %v610_v25 = vmul.f32 %v598_v22, %v1108_v9  ;;  %v607_v27 = vmul.f32 %v594_v23, %v1094_v2  ;;  %v608_v28 = vmul.f32 %v594_v23, %v1098_v4 }
 0x317   : > { %617 = vst [vmem:[%s188_s27 + $0x10] sm:$0xff] %v609_v24  ;;  %618 = vst [vmem:[%s188_s27 + $0x18] sm:$0xff] %v610_v25 }
 0x318   : > { %615 = vst [vmem:[%s188_s27] sm:$0xff] %v607_v27  ;;  %616 = vst [vmem:[%s188_s27 + $0x8] sm:$0xff] %v608_v28  ;;  %v602_v26 = vpop.permute.xlu1 %601 }
 0x319   : > { %v611_v29 = vmul.f32 %v602_v26, %v1090_v0  ;;  %v612_v8 = vmul.f32 %v602_v26, %v1092_v1 }
 0x31b   : > { %619 = vst [vmem:[%s188_s27 + $0x20] sm:$0xff] %v611_v29  ;;  %620 = vst [vmem:[%s188_s27 + $0x28] sm:$0xff] %v612_v8 }
 0x31c   : > { %v606_v2 = vpop.permute.xlu1 %605 }
 0x31d   : > { %v613_v4 = vmul.f32 %v606_v2, %v1100_v5  ;;  %v614_v0 = vmul.f32 %v606_v2, %v1102_v6 }
 0x31f   : > { %621 = vst [vmem:[%s188_s27 + $0x30] sm:$0xff] %v613_v4  ;;  %622 = vst [vmem:[%s188_s27 + $0x38] sm:$0xff] %v614_v0 }
 0x320   : > { %892 = shalt.err (!%p889_p2)
}
 0x321   : > { %s893_s7 = scalar_lea.hbm %s1166_s10, 1024  ;;  %s897_s19 = scalar_lea.hbm %s1215_s3, 2048 }
 0x322   : > { %p894_p4 = scmp.ne.s32.totalorder %s1166_s10, %s893_s7  ;;  %p898_p9 = scmp.lt.u32.totalorder %s1166_s10, %s1215_s3 }
 0x323   : > { %p899_p1 = scmp.lt.u32.totalorder %s897_s19, %s893_s7  ;;  %p901_p6 = scmp.lt.u32.totalorder %s893_s7, %s1166_s10 }
 0x324   : > { %p895_p5 = pnand %p894_p4, %p1222_p11 }
 0x325   : > { %p900_p3 = por %p899_p1, %p898_p9 }
 0x326   : > { %p896_p7 = pneg %p895_p5 }
 0x327   : > { %p902_p12 = por %p901_p6, %p900_p3 }
 0x329   : > { %p903_p13 = pnand %p902_p12, %p896_p7 }
 0x32b   : > { %906 = shalt.err (!%p903_p13)
}
 0x32c   : > { %s954_s26 = smov 256   ;;  %s955_s27 = smov 16  }
 0x32d   : > { %794 = dma.vmem_to_hbm [thread:$0]  (%p1222_p11), %s1161_s28, 1024, %s1166_s10, %s624_s16, %s954_s26, %s954_s26, %s955_s27  }
 0x32e PF: > { %s652_s29 = sand.u32 1, %s933_s12   ;;  %p1223_p8 = scmp.ne.s32.totalorder %s1220_s25, 0 }
 0x32f   : > { %p1224_p10 = scmp.ge.s32.totalorder %s945_s15, 2  ;;  %s653_s30 = scalar_lea.sflag [#allocation4], %s652_s29 }
 0x331   : > { %p801_p0 = pnand %p1224_p10, %p1223_p8 }
 0x333   : > { %928 = dma.done.wait (!%p801_p0), %s653_s30, 1024  }
 0x334   : > { %930 = vsyncadd (!%p801_p0), %s653_s30, 4294966272  ;;  %p16_p2 = scmp.ge.s32.totalorder %s1001_s18, 4   ;;  %s1225_s12 = smov %s937_s13 }
 0x335   : > { %s1226_s13 = smov %s941_s14  ;;  %s1227_s14 = smov %s1013_s21 }
 0x336   : > { %s1228_s15 = smov %s1001_s18  ;;  %18 = sbr.rel (!%p16_p2) target bundleno = 5 (0x5), region = 77 }
 0x33d   :  { %658 = vsyncpa [#allocation3], 1 }
 0x33e   :  { %660 = vsyncpa [#allocation3 + $0x1], 1 }
 0x33f   :  { %661 = vsyncpa [#allocation4], 1 }
 0x340   :  { %663 = vsyncpa [#allocation4 + $0x1], 1 }

</bundles_post_ra>
